<compile_context>
chip_gen: v7x
topology: tpu7x:2x2x1
jax: 0.10.0
libtpu: 0.0.40
codegen_flags: <defaults>
</compile_context>

<pallas_src>
import functools
import math

import jax
import jax.numpy as jnp
from jax.experimental import pallas as pl
from jax.experimental.pallas import tpu as pltpu


# ----------------------------------------------------------------------------
# Pallas kernels
# ----------------------------------------------------------------------------
def _fused_mlp2_kernel(x_ref, w1_ref, b1_ref, w2_ref, b2_ref, o_ref, *,
                       relu2, pool_s):
    x = x_ref[...]                                               # (rows, K) bf16
    h = jnp.dot(x, w1_ref[...], preferred_element_type=jnp.float32)
    h = jnp.maximum(h + b1_ref[...], 0.0)                        # layer-1 ReLU (f32)
    h = h.astype(w2_ref.dtype)                                   # bf16 for 2nd MXU pass
    acc = jnp.dot(h, w2_ref[...], preferred_element_type=jnp.float32)
    acc = acc + b2_ref[...]
    if relu2:
        acc = jnp.maximum(acc, 0.0)
    if pool_s is not None:                                       # neighborhood max-pool
        rows, c_out = acc.shape
        acc = jnp.max(acc.reshape(rows // pool_s, pool_s, c_out), axis=1)
    o_ref[...] = acc.astype(o_ref.dtype)


def _fused_fp1_head_kernel(x_ref, w1_ref, b1_ref, w2_ref, b2_ref,
                           w3_ref, b3_ref, w4_ref, b4_ref,
                           feat_ref, logit_ref):
    # fp1 (conv 278->256 ReLU, conv 256->128 ReLU) + fc1 (128->128 ReLU, 128->C)
    x = x_ref[...]
    h = jnp.dot(x, w1_ref[...], preferred_element_type=jnp.float32)
    h = jnp.maximum(h + b1_ref[...], 0.0).astype(jnp.bfloat16)
    f = jnp.dot(h, w2_ref[...], preferred_element_type=jnp.float32)
    f = jnp.maximum(f + b2_ref[...], 0.0)
    feat_ref[...] = f.astype(feat_ref.dtype)                     # fp1 output (f32)
    f = f.astype(jnp.bfloat16)
    g = jnp.dot(f, w3_ref[...], preferred_element_type=jnp.float32)
    g = jnp.maximum(g + b3_ref[...], 0.0).astype(jnp.bfloat16)   # Dropout(eval)=identity
    logit = jnp.dot(g, w4_ref[...], preferred_element_type=jnp.float32) + b4_ref[...]
    logit_ref[...] = logit.astype(logit_ref.dtype)               # padded logits (f32)


def _round_up(x, m):
    return ((x + m - 1) // m) * m


def _pick_tile(M, cap, align=8, min_blocks=1):
    """Tile t (multiple of `align`, or t == M) with t | padded-M and t <= cap;
    prefer >= min_blocks grid blocks when M is large enough."""
    if min_blocks > 1 and M >= align * min_blocks:
        cap = min(cap, max(align, (M // min_blocks) // align * align))
    if M <= cap:
        return M, M
    t = (cap // align) * align
    while t >= align:
        if M % t == 0:
            return t, M
        t -= align
    t = max(align, (min(cap, 256) // align) * align)
    return t, _round_up(M, t)


def _fused_mlp2_call(x_bf16, w1, b1, w2, b2, *, tile_rows, relu2, pool_s,
                     out_rows, out_cols, out_dtype):
    Mp, K = x_bf16.shape
    Cm = w1.shape[1]
    Co = w2.shape[1]
    return pl.pallas_call(
        functools.partial(_fused_mlp2_kernel, relu2=relu2, pool_s=pool_s),
        out_shape=jax.ShapeDtypeStruct((out_rows, out_cols), out_dtype),
        grid=(Mp // tile_rows,),
        in_specs=[
            pl.BlockSpec((tile_rows, K), lambda i: (i, 0)),
            pl.BlockSpec((K, Cm), lambda i: (0, 0)),
            pl.BlockSpec((1, Cm), lambda i: (0, 0)),
            pl.BlockSpec((Cm, Co), lambda i: (0, 0)),
            pl.BlockSpec((1, Co), lambda i: (0, 0)),
        ],
        out_specs=pl.BlockSpec(
            (tile_rows if pool_s is None else tile_rows // pool_s, out_cols),
            lambda i: (i, 0)),
        compiler_params=pltpu.CompilerParams(
            dimension_semantics=("parallel",),
            vmem_limit_bytes=32 * 1024 * 1024,
        ),
    )(x_bf16, w1, b1, w2, b2)


def pallas_mlp2(x, l1, l2, relu2=True, out_pad_to=None, row_cap=512,
                out_dtype=jnp.bfloat16):
    """x: (M, K) -> (M, C_out): [x@W1+b1, ReLU, @W2+b2 (+ReLU)] in one kernel."""
    M, K = x.shape
    w1 = l1["w"].astype(jnp.bfloat16)
    b1 = l1["b"].reshape(1, -1).astype(jnp.float32)
    w2 = l2["w"]
    b2 = l2["b"]
    N = w2.shape[1]
    Np = N
    if out_pad_to is not None and N < out_pad_to:       # lane-dense output store
        Np = out_pad_to
        w2 = jnp.pad(w2, ((0, 0), (0, Np - N)))
        b2 = jnp.pad(b2, ((0, Np - N),))
    w2 = w2.astype(jnp.bfloat16)
    b2 = b2.reshape(1, Np).astype(jnp.float32)

    xb = x.astype(jnp.bfloat16)
    tm, Mp = _pick_tile(M, row_cap, min_blocks=4)
    if Mp != M:
        xb = jnp.pad(xb, ((0, Mp - M), (0, 0)))
    out = _fused_mlp2_call(xb, w1, b1, w2, b2, tile_rows=tm, relu2=relu2,
                           pool_s=None, out_rows=Mp, out_cols=Np,
                           out_dtype=out_dtype)
    if Mp != M:
        out = out[:M]
    if Np != N:
        out = out[:, :N]
    return out


def pallas_sa_mlp_pool(x_flat, nsample, l1, l2, rows_cap=4096,
                       out_dtype=jnp.bfloat16):
    """x_flat: (P*nsample, C_in) grouped features (neighbor index fastest).
    Returns (P, C_out) = max over each point's nsample neighbors of the fused
    2-layer MLP (ReLU after layer 1 only).  nsample must be a multiple of 8
    (callers pad neighbors by repetition — max-pool is duplicate-invariant)."""
    R, K = x_flat.shape
    P = R // nsample
    w1 = l1["w"].astype(jnp.bfloat16)
    b1 = l1["b"].reshape(1, -1).astype(jnp.float32)
    w2 = l2["w"].astype(jnp.bfloat16)
    b2 = l2["b"].reshape(1, -1).astype(jnp.float32)
    Co = w2.shape[1]

    xb = x_flat.astype(jnp.bfloat16)
    cap = max(1, rows_cap // nsample)
    bm, Pp = _pick_tile(P, cap, align=8, min_blocks=4)
    if Pp != P:
        xb = jnp.pad(xb, ((0, (Pp - P) * nsample), (0, 0)))
    out = _fused_mlp2_call(xb, w1, b1, w2, b2, tile_rows=bm * nsample,
                           relu2=False, pool_s=nsample,
                           out_rows=Pp, out_cols=Co, out_dtype=out_dtype)
    if Pp != P:
        out = out[:P]
    return out


def pallas_fp1_head(x, fp_layers, fc_layers, row_cap=512):
    """Fused fp1 (2 conv+ReLU) + fc1 (conv+ReLU+conv) from VMEM-resident
    activations.  x: (M, K) -> (features (M,128) f32, logits (M,class_num) f32)."""
    M, K = x.shape
    w1 = fp_layers[0]["w"].astype(jnp.bfloat16)
    b1 = fp_layers[0]["b"].reshape(1, -1).astype(jnp.float32)
    w2 = fp_layers[1]["w"].astype(jnp.bfloat16)
    b2 = fp_layers[1]["b"].reshape(1, -1).astype(jnp.float32)
    w3 = fc_layers[0]["w"].astype(jnp.bfloat16)
    b3 = fc_layers[0]["b"].reshape(1, -1).astype(jnp.float32)
    w4 = fc_layers[1]["w"]
    b4 = fc_layers[1]["b"]
    Nc = w4.shape[1]
    Np = max(128, _round_up(Nc, 128))                    # lane-dense logit store
    if Np != Nc:
        w4 = jnp.pad(w4, ((0, 0), (0, Np - Nc)))
        b4 = jnp.pad(b4, ((0, Np - Nc),))
    w4 = w4.astype(jnp.bfloat16)
    b4 = b4.reshape(1, Np).astype(jnp.float32)

    Cm1, Cf, Cm3 = w1.shape[1], w2.shape[1], w3.shape[1]
    xb = x.astype(jnp.bfloat16)
    tm, Mp = _pick_tile(M, row_cap, min_blocks=4)
    if Mp != M:
        xb = jnp.pad(xb, ((0, Mp - M), (0, 0)))

    feats, logits = pl.pallas_call(
        _fused_fp1_head_kernel,
        out_shape=(jax.ShapeDtypeStruct((Mp, Cf), jnp.float32),
                   jax.ShapeDtypeStruct((Mp, Np), jnp.float32)),
        grid=(Mp // tm,),
        in_specs=[
            pl.BlockSpec((tm, K), lambda i: (i, 0)),
            pl.BlockSpec((K, Cm1), lambda i: (0, 0)),
            pl.BlockSpec((1, Cm1), lambda i: (0, 0)),
            pl.BlockSpec((Cm1, Cf), lambda i: (0, 0)),
            pl.BlockSpec((1, Cf), lambda i: (0, 0)),
            pl.BlockSpec((Cf, Cm3), lambda i: (0, 0)),
            pl.BlockSpec((1, Cm3), lambda i: (0, 0)),
            pl.BlockSpec((Cm3, Np), lambda i: (0, 0)),
            pl.BlockSpec((1, Np), lambda i: (0, 0)),
        ],
        out_specs=(pl.BlockSpec((tm, Cf), lambda i: (i, 0)),
                   pl.BlockSpec((tm, Np), lambda i: (i, 0))),
        compiler_params=pltpu.CompilerParams(
            dimension_semantics=("parallel",),
            vmem_limit_bytes=32 * 1024 * 1024,
        ),
    )(xb, w1, b1, w2, b2, w3, b3, w4, b4)
    if Mp != M:
        feats, logits = feats[:M], logits[:M]
    if Np != Nc:
        logits = logits[:, :Nc]
    return feats, logits


# ----------------------------------------------------------------------------
# Plain-JAX glue: neighbor search / gathers (data-dependent indexing).
# All tensors are CHANNEL-LAST: (B, N, C).
# ----------------------------------------------------------------------------
def square_distance(src, dst):
    d = -2.0 * jnp.einsum("bnc,bmc->bnm", src, dst)
    d = d + jnp.sum(src ** 2, axis=-1)[:, :, None]
    d = d + jnp.sum(dst ** 2, axis=-1)[:, None, :]
    return d


def furthest_point_sample(xyz, npoint):
    # xyz: (B, N, 3) -> (B, npoint) indices (deterministic, starts at index 0)
    B, N, _ = xyz.shape

    def body(i, state):
        idxs, dists, farthest = state
        idxs = idxs.at[:, i].set(farthest)
        centroid = jnp.take_along_axis(
            xyz, jnp.broadcast_to(farthest[:, None, None], (B, 1, 3)), axis=1)
        d = jnp.sum((xyz - centroid) ** 2, axis=-1)
        dists = jnp.minimum(dists, d)
        farthest = jnp.argmax(dists, axis=-1).astype(jnp.int32)
        return idxs, dists, farthest

    init = (jnp.zeros((B, npoint), jnp.int32),
            jnp.full((B, N), 1e10, jnp.float32),
            jnp.zeros((B,), jnp.int32))
    idxs, _, _ = jax.lax.fori_loop(0, npoint, body, init)
    return idxs


def query_knn(nsample, xyz, new_xyz):
    # k nearest neighbors of new_xyz in xyz (include_self=True); top_k not argsort.
    sqr = square_distance(new_xyz, xyz)                   # (B, S, N)
    _, idx = jax.lax.top_k(-sqr, nsample)                 # nearest first
    return idx.astype(jnp.int32)


def group_points(points, idx):
    # points: (B, N, C), idx: (B, S, K) -> (B, S, K, C)   (channel-last gather)
    B, _, C = points.shape
    S, K = idx.shape[1], idx.shape[2]
    flat = jnp.broadcast_to(idx.reshape(B, S * K, 1), (B, S * K, C))
    return jnp.take_along_axis(points, flat, axis=1).reshape(B, S, K, C)


def three_interpolate(xyz1, xyz2, points2):
    # xyz1: (B, N, 3), xyz2: (B, M, 3), points2: (B, M, C) -> (B, N, C)
    B, N, _ = xyz1.shape
    M = xyz2.shape[1]
    sqr = square_distance(xyz1, xyz2)
    if M < 3:
        sqr = jnp.concatenate(
            [sqr, jnp.full((B, N, 3 - M), 1e40, sqr.dtype)], axis=-1)
    neg_d, idx = jax.lax.top_k(-sqr, 3)
    dist = jnp.maximum(-neg_d, 1e-10)
    idx = jnp.clip(idx, 0, M - 1).astype(jnp.int32)
    recip = 1.0 / dist
    weight = recip / jnp.sum(recip, axis=-1, keepdims=True)      # (B, N, 3)
    C = points2.shape[-1]
    flat = jnp.broadcast_to(idx.reshape(B, N * 3, 1), (B, N * 3, C))
    g = jnp.take_along_axis(points2, flat, axis=1).reshape(B, N, 3, C)
    return jnp.sum(g * weight[:, :, :, None], axis=2)


# ----------------------------------------------------------------------------
# Module pieces built on the fused Pallas kernels (channel-last throughout)
# ----------------------------------------------------------------------------
def sa_module_knn(xyz, points, npoint, nsample, layers):
    # PointNet_SA_Module_KNN (group_all=False, if_bn=False, use_xyz=True)
    B, N, _ = xyz.shape
    fps_idx = furthest_point_sample(xyz, npoint)                  # (B, npoint)
    new_xyz = jnp.take_along_axis(
        xyz, jnp.broadcast_to(fps_idx[:, :, None], (B, npoint, 3)), axis=1)
    idx = query_knn(nsample, xyz, new_xyz)                        # (B, npoint, k)

    # Pad neighbor count to a multiple of 8 by repeating the nearest neighbor:
    # the MLP+max-pool is duplicate-invariant and the in-VMEM reshape stays
    # tile-aligned.
    k_pad = _round_up(nsample, 8)
    if k_pad != nsample:
        idx = jnp.concatenate(
            [idx, jnp.broadcast_to(idx[:, :, :1], (B, npoint, k_pad - nsample))],
            axis=-1)

    grouped_xyz = group_points(xyz, idx)                          # (B, S, Kp, 3)
    grouped_rel = (grouped_xyz - new_xyz[:, :, None, :]).astype(jnp.bfloat16)
    grouped_pts = group_points(points, idx).astype(jnp.bfloat16)  # (B, S, Kp, C)
    new_points = jnp.concatenate([grouped_rel, grouped_pts], axis=-1)
    C_in = new_points.shape[-1]
    feat = new_points.reshape(B * npoint * k_pad, C_in)
    pooled = pallas_sa_mlp_pool(feat, k_pad, layers[0], layers[1])  # (B*S, C_out)
    return new_xyz, pooled.reshape(B, npoint, -1)


def sa_module_all(xyz, points, layers):
    # PointNet_SA_Module_KNN with group_all=True
    B, N2, _ = xyz.shape
    new_xyz = jnp.zeros((B, 1, 3), jnp.float32)
    cat = jnp.concatenate(
        [xyz.astype(jnp.bfloat16), points.astype(jnp.bfloat16)], axis=-1)
    feat = cat.reshape(B * N2, -1)
    pooled = pallas_sa_mlp_pool(feat, N2, layers[0], layers[1])   # (B, C_out)
    return new_xyz, pooled[:, None, :]


def fp_module(xyz1, xyz2, points1, points2, layers):
    # PointNet_FP_Module (use_points1=True, if_bn=True folded into weights)
    interp = three_interpolate(xyz1, xyz2, points2)               # (B, N, C2)
    new_points = jnp.concatenate(
        [interp.astype(jnp.bfloat16), points1.astype(jnp.bfloat16)], axis=-1)
    B, N, C_in = new_points.shape
    h = pallas_mlp2(new_points.reshape(B * N, C_in), layers[0], layers[1],
                    relu2=True)
    return h.reshape(B, N, -1)


def forward(params, point_cloud_last, cls_label):
    # point_cloud_last: (B, N, 3); cls_label: (B, 16) one-hot
    B, N, _ = point_cloud_last.shape
    l0_xyz = point_cloud_last                                     # (B, N, 3)
    l0_points = point_cloud_last
    cls_one_hot = jnp.broadcast_to(cls_label[:, None, :], (B, N, 16))

    l1_xyz, l1_points = sa_module_knn(l0_xyz, l0_points, 1024, 12, params["sa1"])
    l2_xyz, l2_points = sa_module_knn(l1_xyz, l1_points, 512, 8, params["sa2"])
    l3_xyz, l3_points = sa_module_all(l2_xyz, l2_points, params["sa3"])

    l0_in = jnp.concatenate([cls_one_hot, l0_xyz, l0_points], axis=-1)  # (B, N, 22)
    l2_points = fp_module(l2_xyz, l3_xyz, l2_points, l3_points, params["fp3"])
    l1_points = fp_module(l1_xyz, l2_xyz, l1_points, l2_points, params["fp2"])

    # fp1 + fc1 fused: features and logits from one kernel
    interp = three_interpolate(l0_xyz, l1_xyz, l1_points)               # (B, N, 256)
    fp1_in = jnp.concatenate(
        [interp.astype(jnp.bfloat16), l0_in.astype(jnp.bfloat16)], axis=-1)
    feats, logits = pallas_fp1_head(
        fp1_in.reshape(B * N, -1), params["fp1"], params["fc1"])
    l0_feats = jnp.transpose(feats.reshape(B, N, -1), (0, 2, 1))        # (B, 128, N)
    logit1 = jnp.transpose(logits.reshape(B, N, -1), (0, 2, 1))         # (B, cls, N)
    return ([logit1], [l0_feats])


# ----------------------------------------------------------------------------
# Deterministic parameter init (PyTorch-style uniform bound = 1/sqrt(fan_in)),
# with eval-mode BatchNorm folded in where the PyTorch module has BN.
# ----------------------------------------------------------------------------
def make_linear(key, c_in, c_out, fold_bn=False):
    kw, kb = jax.random.split(key)
    bound = 1.0 / math.sqrt(c_in)
    w = jax.random.uniform(kw, (c_in, c_out), jnp.float32, -bound, bound)
    b = jax.random.uniform(kb, (c_out,), jnp.float32, -bound, bound)
    if fold_bn:  # BN default init, eval mode: y = (x - 0)/sqrt(1+eps)*1 + 0
        scale = 1.0 / math.sqrt(1.0 + 1e-5)
        w = w * scale
        b = b * scale
    return {"w": w, "b": b}


def init_params(key, class_num):
    keys = list(jax.random.split(key, 14))
    ki = iter(keys)

    def lin(c_in, c_out, fold_bn=False):
        return make_linear(next(ki), c_in, c_out, fold_bn)

    return {
        "sa1": [lin(3 + 3, 64), lin(64, 128)],
        "sa2": [lin(128 + 3, 128), lin(128, 256)],
        "sa3": [lin(256 + 3, 256), lin(256, 512)],
        "fp3": [lin(512 + 256, 256, True), lin(256, 256, True)],
        "fp2": [lin(256 + 128, 256, True), lin(256, 256, True)],
        "fp1": [lin(256 + 22, 256, True), lin(256, 128, True)],
        "fc1": [lin(128, 128, True), lin(128, class_num)],
    }


# ----------------------------------------------------------------------------
if __name__ == "__main__":
    key = jax.random.PRNGKey(0)
    B, N, C = 2, 1024, 3          # N must be >= 1024 (sa_module_1 samples 1024 pts)
    class_num = 13
    k_pts, k_cls, k_par = jax.random.split(key, 3)

    pts = jax.random.normal(k_pts, (B, N, C), jnp.float32)
    point_cloud = [pts]                                   # forward uses point_cloud[-1]
    cls_idx = jax.random.randint(k_cls, (B,), 0, 16)
    cls_label = jax.nn.one_hot(cls_idx, 16, dtype=jnp.float32)  # (B, 16)

    params = init_params(k_par, class_num)

    # --- self-checks of the fused Pallas kernels against jnp references (bf16) ---
    def _bf(v):
        return v.astype(jnp.bfloat16).astype(jnp.float32)

    xs = jax.random.normal(jax.random.PRNGKey(1), (40, 22), jnp.float32)
    w1 = 0.1 * jax.random.normal(jax.random.PRNGKey(2), (22, 64), jnp.float32)
    b1 = 0.1 * jax.random.normal(jax.random.PRNGKey(3), (64,), jnp.float32)
    w2 = 0.1 * jax.random.normal(jax.random.PRNGKey(4), (64, 128), jnp.float32)
    b2 = 0.1 * jax.random.normal(jax.random.PRNGKey(5), (128,), jnp.float32)
    h_ref = jnp.maximum(_bf(xs) @ _bf(w1) + b1, 0.0)
    ref = _bf(jnp.maximum(_bf(h_ref) @ _bf(w2) + b2, 0.0))      # bf16-rounded store
    got = pallas_mlp2(xs, {"w": w1, "b": b1}, {"w": w2, "b": b2}, relu2=True)
    assert jnp.allclose(got.astype(jnp.float32), ref, atol=2e-2, rtol=2e-2)

    xg = jax.random.normal(jax.random.PRNGKey(6), (16 * 8, 6), jnp.float32)
    wg1 = 0.1 * jax.random.normal(jax.random.PRNGKey(7), (6, 64), jnp.float32)
    bg1 = 0.1 * jax.random.normal(jax.random.PRNGKey(8), (64,), jnp.float32)
    wg2 = 0.1 * jax.random.normal(jax.random.PRNGKey(9), (64, 128), jnp.float32)
    bg2 = 0.1 * jax.random.normal(jax.random.PRNGKey(10), (128,), jnp.float32)
    hg = jnp.maximum(_bf(xg) @ _bf(wg1) + bg1, 0.0)
    accg = _bf(hg) @ _bf(wg2) + bg2
    ref_pool = _bf(jnp.max(accg.reshape(16, 8, 128), axis=1))
    got_pool = pallas_sa_mlp_pool(xg, 8, {"w": wg1, "b": bg1}, {"w": wg2, "b": bg2})
    assert jnp.allclose(got_pool.astype(jnp.float32), ref_pool, atol=2e-2, rtol=2e-2)

    # --- full forward ---
    fwd = jax.jit(forward)
    (logits_list, feats_list) = fwd(params, point_cloud[-1], cls_label)
    logit1 = logits_list[0]
    l0_feats = feats_list[0]
    jax.block_until_ready(logit1)
    jax.block_until_ready(l0_feats)

    assert logit1.shape == (B, class_num, N), logit1.shape
    assert l0_feats.shape == (B, 128, N), l0_feats.shape
    assert bool(jnp.all(jnp.isfinite(logit1)))
    assert bool(jnp.all(jnp.isfinite(l0_feats)))
    print("KERNEL_OK")
</pallas_src>

<mosaic_0001>
module attributes {stable_mosaic.version = 11 : i64} {
  func.func @_fused_mlp2_kernel(%arg0: i32, %arg1: memref<8x22xbf16, #tpu.memory_space<vmem>>, %arg2: memref<22x64xbf16, #tpu.memory_space<vmem>>, %arg3: memref<1x64xf32, #tpu.memory_space<vmem>>, %arg4: memref<64x128xbf16, #tpu.memory_space<vmem>>, %arg5: memref<1x128xf32, #tpu.memory_space<vmem>>, %arg6: memref<8x128xbf16, #tpu.memory_space<vmem>>) attributes {dimension_semantics = [#tpu.dimension_semantics<parallel>], iteration_bounds = array<i64: 5>, scalar_prefetch = 0 : i64, scratch_operands = 0 : i64, tpu.core_type = #tpu.core_type<tc>, window_params = [{transform_indices = @transform_0, window_bounds = array<i64: 8, 22>}, {pipeline_mode = #tpu.pipeline_mode<synchronous>, transform_indices = @transform_1, window_bounds = array<i64: 22, 64>}, {pipeline_mode = #tpu.pipeline_mode<synchronous>, transform_indices = @transform_2, window_bounds = array<i64: 1, 64>}, {pipeline_mode = #tpu.pipeline_mode<synchronous>, transform_indices = @transform_3, window_bounds = array<i64: 64, 128>}, {pipeline_mode = #tpu.pipeline_mode<synchronous>, transform_indices = @transform_4, window_bounds = array<i64: 1, 128>}, {transform_indices = @transform_5, window_bounds = array<i64: 8, 128>}]} {
    %c0 = arith.constant 0 : index
    %c0_0 = arith.constant 0 : index
    %0 = vector.load %arg1[%c0, %c0_0] : memref<8x22xbf16, #tpu.memory_space<vmem>>, vector<8x22xbf16>
    %c0_1 = arith.constant 0 : index
    %c0_2 = arith.constant 0 : index
    %1 = vector.load %arg2[%c0_1, %c0_2] : memref<22x64xbf16, #tpu.memory_space<vmem>>, vector<22x64xbf16>
    %cst = arith.constant dense<0.000000e+00> : vector<8x64xf32>
    %2 = tpu.matmul %0, %1, %cst {dimension_numbers = #tpu.dot_dimension_numbers<[1], [0], [0], [1], [0, 0, 1, 1], [], []>} : vector<8x22xbf16>, vector<22x64xbf16>, vector<8x64xf32> -> vector<8x64xf32>
    %c0_3 = arith.constant 0 : index
    %c0_4 = arith.constant 0 : index
    %3 = vector.load %arg3[%c0_3, %c0_4] : memref<1x64xf32, #tpu.memory_space<vmem>>, vector<1x64xf32>
    %4 = vector.broadcast %3 : vector<1x64xf32> to vector<8x64xf32>
    %5 = arith.addf %2, %4 : vector<8x64xf32>
    %cst_5 = arith.constant 0.000000e+00 : f32
    %6 = vector.broadcast %cst_5 : f32 to vector<8x64xf32>
    %7 = arith.maximumf %5, %6 : vector<8x64xf32>
    %8 = arith.truncf %7 : vector<8x64xf32> to vector<8x64xbf16>
    %c0_6 = arith.constant 0 : index
    %c0_7 = arith.constant 0 : index
    %9 = vector.load %arg4[%c0_6, %c0_7] : memref<64x128xbf16, #tpu.memory_space<vmem>>, vector<64x128xbf16>
    %cst_8 = arith.constant dense<0.000000e+00> : vector<8x128xf32>
    %10 = tpu.matmul %8, %9, %cst_8 {dimension_numbers = #tpu.dot_dimension_numbers<[1], [0], [0], [1], [0, 0, 1, 1], [], []>} : vector<8x64xbf16>, vector<64x128xbf16>, vector<8x128xf32> -> vector<8x128xf32>
    %c0_9 = arith.constant 0 : index
    %c0_10 = arith.constant 0 : index
    %11 = vector.load %arg5[%c0_9, %c0_10] : memref<1x128xf32, #tpu.memory_space<vmem>>, vector<1x128xf32>
    %12 = vector.broadcast %11 : vector<1x128xf32> to vector<8x128xf32>
    %13 = arith.addf %10, %12 : vector<8x128xf32>
    %cst_11 = arith.constant 0.000000e+00 : f32
    %14 = vector.broadcast %cst_11 : f32 to vector<8x128xf32>
    %15 = arith.maximumf %13, %14 : vector<8x128xf32>
    %16 = arith.truncf %15 : vector<8x128xf32> to vector<8x128xbf16>
    %c0_12 = arith.constant 0 : index
    %c0_13 = arith.constant 0 : index
    %17 = vector.load %arg6[%c0_12, %c0_13] : memref<8x128xbf16, #tpu.memory_space<vmem>>, vector<8x128xbf16>
    tpu.vector_store %arg6[%c0_12, %c0_13], %16 {strides = array<i32>} : memref<8x128xbf16, #tpu.memory_space<vmem>>, vector<8x128xbf16>,
    return
  }
  func.func @transform_0(%arg0: i32) -> (i32, i32) {
    %c0_i32 = arith.constant 0 : i32
    %c0_i32_0 = arith.constant 0 : i32
    return %arg0, %c0_i32 : i32, i32
  }
  func.func @transform_1(%arg0: i32) -> (i32, i32) {
    %c0_i32 = arith.constant 0 : i32
    %c0_i32_0 = arith.constant 0 : i32
    %c0_i32_1 = arith.constant 0 : i32
    return %c0_i32, %c0_i32_0 : i32, i32
  }
  func.func @transform_2(%arg0: i32) -> (i32, i32) {
    %c0_i32 = arith.constant 0 : i32
    %c0_i32_0 = arith.constant 0 : i32
    %c0_i32_1 = arith.constant 0 : i32
    return %c0_i32, %c0_i32_0 : i32, i32
  }
  func.func @transform_3(%arg0: i32) -> (i32, i32) {
    %c0_i32 = arith.constant 0 : i32
    %c0_i32_0 = arith.constant 0 : i32
    %c0_i32_1 = arith.constant 0 : i32
    return %c0_i32, %c0_i32_0 : i32, i32
  }
  func.func @transform_4(%arg0: i32) -> (i32, i32) {
    %c0_i32 = arith.constant 0 : i32
    %c0_i32_0 = arith.constant 0 : i32
    %c0_i32_1 = arith.constant 0 : i32
    return %c0_i32, %c0_i32_0 : i32, i32
  }
  func.func @transform_5(%arg0: i32) -> (i32, i32) {
    %c0_i32 = arith.constant 0 : i32
    %c0_i32_0 = arith.constant 0 : i32
    return %arg0, %c0_i32 : i32, i32
  }
}

</mosaic_0001>

<bundles_post_ra>
// kernel: tpu_custom_call.1
= control target key start
LH: loop header
LB: loop body
LE: loop exit
PB: predicated region body
PF: predicated region fallthrough
CT: control target
= control target key end

     0   :  { %10 = vsyncpa [#allocation3], 0  ;;  %s872_s0 = inlined_call_operand.vmem [shape: bf16[40,22], index: 0, kind: input, shape index: {}]   ;;  %s873_s1 = inlined_call_operand.hbm [shape: bf16[22,64], index: 1, kind: input, shape index: {}]   ;;  %s874_s2 = inlined_call_operand.vmem [shape: f32[1,64], index: 2, kind: input, shape index: {}]   ;;  %s875_s3 = inlined_call_operand.vmem [shape: bf16[64,128], index: 3, kind: input, shape index: {}]   ;;  %s876_s4 = inlined_call_operand.vmem [shape: f32[1,128], index: 4, kind: input, shape index: {}]   ;;  %s877_s5 = inlined_call_operand.hbm [shape: bf16[40,128], index: 5, kind: output, shape index: {}]  }
   0x1   :  { %11 = vsyncpa [#allocation4], 0 }
   0x2   :  { %13 = vsyncpa [#allocation4 + $0x1], 0  ;;  %s719_s18 = smov 0   ;;  %s721_s19 = smov 0  }
   0x3   :  { %s723_s20 = smov 0   ;;  %s725_s21 = smov 0  }
   0x4 LB: > { %s740_s22 = sadd.s32 4294967295, %s681_s21   ;;  %s477_s23 = sadd.s32 4294967294, %s681_s21   ;;  %s681_s21 = sphi %s725_s21, %s893_s21   ;;  %s677_s20 = sphi %s723_s20, %s892_s20   ;;  %s673_s19 = sphi %s721_s19, %s891_s19   ;;  %s669_s18 = sphi %s719_s18, %s890_s18  }
   0x5   : > { %s744_s24 = sadd.s32 1, %s681_s21   ;;  %s136_s25 = sadd.s32 1, %s677_s20 }
   0x6   : > { %s133_s26 = ssub.s32 %s681_s21, %s744_s24  ;;  %p146_p0 = scmp.ne.s32.totalorder %s677_s20, %s673_s19 }
   0x7   : > { %p134_p1 = scmp.eq.s32.totalorder %s133_s26, 0  ;;  %p147_p2 = scmp.eq.s32.totalorder %s740_s22, 4 }
   0x8   : > { %p152_p3 = scmp.ne.s32.totalorder %s673_s19, %s669_s18  ;;  %p153_p4 = scmp.eq.s32.totalorder %s477_s23, 4 }
   0x9   : > { %s755_s27 = scalar_select %p134_p1, %s677_s20, %s136_s25  }
   0xa   : > { %p757_p5 = por %p147_p2, %p146_p0  ;;  %p761_p6 = por %p153_p4, %p152_p3 }
   0xb   : > { %p478_p7 = scmp.ge.s32.totalorder %s681_s21, 1  ;;  %p160_p8 = scmp.lt.s32.totalorder %s681_s21, 6 }
   0xc   : > { %s881_s28 = scalar_select %p757_p5, 1, 0 }
   0xd   : > { %s882_s29 = scalar_select %p761_p6, 1, 0 }
   0xe   : > { %p878_p9 = scmp.eq.s32.totalorder %s740_s22, 0  ;;  %p768_p10 = pnand %p478_p7, %p160_p8 }
   0xf   : > { %s683_s6 = smov [#allocation2]   ;;  %s587_s11 = scalar_lea.hbm %s873_s1, 192 }
  0x10   : > { %s883_s30 = scalar_select %p768_p10, 1, 0 }
  0x11   : > { %s172_s7 = sshll.u32 %s683_s6, 4  ;;  %p533_p11 = pneg %p768_p10  ;;  %s173_s7 = int_to_ptr.vmem [resolvable:$true] %s172_s7 }
  0x12   : > { %p588_p13 = scmp.ne.s32.totalorder %s873_s1, %s587_s11  ;;  %p594_p3 = scmp.lt.u32.totalorder %s587_s11, %s873_s1 }
  0x13   : > { %p776_p12 = pnand %p878_p9, %p533_p11 }
  0x15   : > { %p589_p0 = pneg %p776_p12 }
  0x17   : > { %p590_p1 = pnand %p589_p0, %p588_p13 }
  0x19   : > { %p591_p2 = pneg %p590_p1 }
  0x1b   : > { %p596_p4 = pnand %p594_p3, %p591_p2 }
  0x1d   : > { %599 = shalt.err (!%p596_p4)
}
  0x1e   : > { %s600_s16 = scalar_lea.vmem %s173_s7, 192  ;;  %p608_p9 = scmp.lt.s32.totalorder %s173_s7, %s173_s7 }
  0x1f   : > { %p601_p7 = scmp.ne.s32.totalorder %s173_s7, %s600_s16  ;;  %p609_p6 = scmp.lt.s32.totalorder %s600_s16, %s600_s16 }
  0x21   : > { %p603_p8 = pnand %p601_p7, %p589_p0  ;;  %p610_p5 = por %p609_p6, %p608_p9 }
  0x23   : > { %p604_p11 = pneg %p603_p8 }
  0x25   : > { %p611_p10 = pnand %p610_p5, %p604_p11 }
  0x27   : > { %614 = shalt.err (!%p611_p10)
}
  0x28   : > { %s684_s17 = smov 64   ;;  %s685_s23 = smov 4  }
  0x29   : > { %536 = dma.hbm_to_vmem [thread:$0]  (!%p776_p12), %s873_s1, 192, %s173_s7, [#allocation3], %s684_s17, %s684_s17, %s685_s23  }
  0x2a   : > { %p885_p13 = scmp.ne.s32.totalorder %s883_s30, 0 }
  0x2b   : > { %p886_p1 = scmp.eq.s32.totalorder (!%p885_p13), %s740_s22, 0 }
  0x2c   : > { %204 = sbr.rel (%p885_p13) target bundleno = 512 (0x200), region = 40 }
  0x33   : > { %660 = dma.done.wait (%p886_p1), [#allocation3], 192   ;;  %p887_p0 = pmov %p886_p1 }
  0x34   : > { %p231_p5 = scmp.lt.s32.totalorder %s740_s22, 4  ;;  %v686_v0 = vmov 0.0   ;;  %vm687_vm0 = vmmov 0   ;;  %vm260_vm1 = vcmask 1042432   ;;  %v581_v1 = vld [vmem:[#allocation2] sm:$0xff]   ;;  %v584_v5 = vld [vmem:[%s875_s3 + $0x8] sm:$0xff]  }
  0x35   : > { %662 = vsyncadd (%p887_p0), [#allocation3], 4294967104  ;;  %507 = vmatprep.subr.bf16.mxu0 %v686_v0  ;;  %511 = vmatprep.mubr.msk.bf16.mxu0 %vm687_vm0, %v686_v0  ;;  %v582_v2 = vld [vmem:[#allocation2 + $0x8] ss:$0 sps:$4 sm:$0x77]   ;;  %v583_v3 = vld [vmem:[%s875_s3] sm:$0xff]  }
  0x36   : > { %515 = vmatprep.subr.bf16.mxu1 %v686_v0  ;;  %523 = vmatprep.mubr.msk.bf16.mxu1 %vm687_vm0, %v686_v0  ;;  %s232_s6 = scalar_select %p231_p5, %s740_s22, 4  ;;  %v262_v4 = vsel %vm260_vm1, %v582_v2, 0  ;;  %vm256_vm2 = vcmask 179200   ;;  %v585_v7 = vld [vmem:[%s875_s3 + $0x10] sm:$0xff]   ;;  %v586_v8 = vld [vmem:[%s875_s3 + $0x18] sm:$0xff]   ;;  %vm345_vm3 = vcmask 523264  }
  0x37   : > { %508 = vmatpush3.bf16.msra.mxu0 %v581_v1  ;;  %516 = vmatpush3.bf16.msra.mxu1 %v583_v3  ;;  %v485_v9 = vld [vmem:[%s874_s2] ss:$0 sm:$0xff]  ;;  %s228_s26 = sand.u32 1, %s673_s19   ;;  %s496_s8 = sshll.u32 %s740_s22, 6 }
  0x38   : > { %s484_s30 = sshll.u32 %s232_s6, 2  ;;  %509 = vmatprep.subr.bf16.mxu0 %v686_v0  ;;  %517 = vmatprep.subr.bf16.mxu1 %v686_v0  ;;  %s483_s6 = sshll.u32 %s228_s26, 2  ;;  %v489_v17 = vld [vmem:[%s876_s4] ss:$0 sm:$0xff] }
  0x39   : > { %s234_s11 = scalar_lea.vmem %s872_s0, %s484_s30  ;;  %s230_s9 = scalar_lea.vmem [#allocation5], %s483_s6 }
  0x3a   : > { %v236_v6 = vld [vmem:[%s234_s11] sm:$0xf]  ;;  %s406_s10 = sshll.u32 %s230_s9, 4  ;;  %s830_s13 = scalar_lea.hbm %s877_s5, %s496_s8  ;;  %s832_s10 = int_to_ptr.vmem [resolvable:$true] %s406_s10 }
  0x3b   : > { %510 = vmatpush3.bf16.msra.mxu0 %v262_v4  ;;  %518 = vmatpush3.bf16.msra.mxu1 %v584_v5  ;;  %s393_s14 = scalar_lea.sflag [#allocation4], %s228_s26  ;;  %s615_s15 = scalar_lea.vmem %s832_s10, 64 }
  0x3c   : > { %519 = vmatprep.subr.bf16.mxu1 %v686_v0  ;;  %p616_p6 = scmp.ne.s32.totalorder %s832_s10, %s615_s15  ;;  %p888_p9 = scmp.ne.s32.totalorder %s881_s28, 0 }
  0x3d   : > { %s688_s22 = smov [#allocation5]  }
  0x3e   : > { %512 = vmatmul.mubr.msk.bf16.vlgmr.msra.gmra.mrb[0].mxu0 %vm256_vm2, %v236_v6  ;;  %p617_p10 = pnand %p616_p6, %p888_p9  ;;  %s619_s16 = sshll.u32 %s688_s22, 4  ;;  %s620_s16 = int_to_ptr.vmem [resolvable:$false] %s619_s16 }
  0x3f   : > { %520 = vmatpush3.bf16.msra.mxu1 %v585_v7  ;;  %s621_s17 = scalar_lea.vmem %s620_s16, 128  ;;  %p622_p2 = scmp.lt.s32.totalorder %s832_s10, %s620_s16 }
  0x40   : > { %521 = vmatprep.subr.bf16.mxu1 %v686_v0  ;;  %p618_p12 = pneg %p617_p10  ;;  %p623_p3 = scmp.lt.s32.totalorder %s621_s17, %s615_s15 }
  0x42   : > { %p624_p4 = por %p623_p3, %p622_p2 }
  0x43   : > { %522 = vmatpush3.bf16.msra.mxu1 %v586_v8 }
  0x44   : > { %p625_p7 = pnand %p624_p4, %p618_p12 }
 0x111   : > { %v298_v10 = vpop.f32.mrb[0].mxu0 }
 0x112   : > { %v299_v11 = vadd.f32 %v485_v9, %v298_v10  ;;  %v513_v12 = vpop.f32.mrb[1].mxu0 }
 0x113   : > { %v301_v13 = vpop.f32.mrb[2].mxu0 }
 0x114   : > { %v304_v14 = vmax.f32 %v299_v11, 0.0  ;;  %v514_v15 = vpop.f32.mrb[3].mxu0 }
 0x116   : > { %v305_v16 = vpack.c.bf16 %v304_v14, %v304_v14 }
 0x118   : > { %524 = vmatmul.mubr.msk.bf16.vlgmr.msra.gmra.mrb[0].mxu1 %vm345_vm3, %v305_v16 }
 0x1eb   : > { %v383_v18 = vpop.f32.mrb[0].mxu1 }
 0x1ec   : > { %v384_v19 = vadd.f32 %v489_v17, %v383_v18  ;;  %v525_v20 = vpop.f32.mrb[1].mxu1 }
 0x1ed   : > { %v386_v21 = vpop.f32.mrb[2].mxu1 }
 0x1ee   : > { %v389_v22 = vmax.f32 %v384_v19, 0.0  ;;  %v526_v23 = vpop.f32.mrb[3].mxu1 }
 0x1f0   : > { %v390_v24 = vpack.c.bf16 %v389_v22, %v389_v22 }
 0x1f2   : > { %391 = vst [vmem:[%s230_s9] sm:$0xf] %v390_v24 }
 0x1f3   : > { %628 = shalt.err (!%p625_p7)
}
 0x1f4   : > { %s629_s23 = scalar_lea.hbm %s830_s13, 64  ;;  %s633_s6 = scalar_lea.hbm %s877_s5, 320 }
 0x1f5   : > { %p630_p8 = scmp.ne.s32.totalorder %s830_s13, %s629_s23  ;;  %p634_p1 = scmp.lt.u32.totalorder %s830_s13, %s877_s5 }
 0x1f6   : > { %p635_p0 = scmp.lt.u32.totalorder %s633_s6, %s629_s23  ;;  %p637_p6 = scmp.lt.u32.totalorder %s629_s23, %s830_s13 }
 0x1f7   : > { %p631_p11 = pnand %p630_p8, %p888_p9 }
 0x1f8   : > { %p636_p5 = por %p635_p0, %p634_p1 }
 0x1f9   : > { %p632_p13 = pneg %p631_p11 }
 0x1fa   : > { %p638_p10 = por %p637_p6, %p636_p5 }
 0x1fc   : > { %p639_p12 = pnand %p638_p10, %p632_p13 }
 0x1fe   : > { %642 = shalt.err (!%p639_p12)
}
 0x1ff   : > { %531 = dma.vmem_to_hbm [thread:$0]  (%p888_p9), %s832_s10, 64, %s830_s13, %s393_s14  }
 0x200 PF: > { %p543_p2 = scmp.ge.s32.totalorder %s681_s21, 2  ;;  %s418_s8 = sand.u32 1, %s669_s18  }
 0x201   : > { %p889_p3 = scmp.ne.s32.totalorder %s882_s29, 0  ;;  %s419_s9 = scalar_lea.sflag [#allocation4], %s418_s8 }
 0x203   : > { %p538_p4 = pnand %p543_p2, %p889_p3 }
 0x205   : > { %664 = dma.done.wait (!%p538_p4), %s419_s9, 64  }
 0x206   : > { %666 = vsyncadd (!%p538_p4), %s419_s9, 4294967232  ;;  %p16_p7 = scmp.ge.s32.totalorder %s744_s24, 7   ;;  %s890_s18 = smov %s673_s19 }
 0x207   : > { %s891_s19 = smov %s677_s20  ;;  %s892_s20 = smov %s755_s27 }
 0x208   : > { %s893_s21 = smov %s744_s24  ;;  %18 = sbr.rel (!%p16_p7) target bundleno = 4 (0x4), region = 80 }
 0x20f   :  { %424 = vsyncpa [#allocation3], 1 }
 0x210   :  { %426 = vsyncpa [#allocation3 + $0x1], 1 }
 0x211   :  { %427 = vsyncpa [#allocation4], 1 }
 0x212   :  { %429 = vsyncpa [#allocation4 + $0x1], 1 }

</bundles_post_ra>
